<compile_context>
chip_gen: v7x
topology: tpu7x:2x2x1
jax: 0.10.0
libtpu: 0.0.40
codegen_flags: <defaults>
</compile_context>

<pallas_src>
import functools

import jax
import jax.numpy as jnp
from jax.experimental import pallas as pl
from jax.experimental.pallas import tpu as pltpu


def _cross_attn_kernel(x_ref, wq_ref, k_ref, v_ref, wp_ref, bp_ref, o_ref, *, num_heads):
    """One (TM, C) slab of query rows against the full head-batched text K/V."""
    tm, C = x_ref.shape
    cdt = k_ref.dtype                      # compute dtype (bf16 by default, f32 optional)

    # 1) Per-head query projection, heads on a leading (batch) axis.
    #    Wq is pre-laid-out on the host as (H, C, hd) with the qk scale folded in.
    xb = jnp.broadcast_to(x_ref[...], (num_heads,) + x_ref.shape)        # (H, TM, C)
    q_h = jnp.einsum("hmc,hcd->hmd", xb, wq_ref[...],
                     preferred_element_type=jnp.float32).astype(cdt)      # (H, TM, hd)

    # 2) Scores as one head-batched tensor.
    s = jnp.einsum("hmd,htd->hmt", q_h, k_ref[...],
                   preferred_element_type=jnp.float32)                    # (H, TM, T)

    # 3) Softmax over the text tokens (max-subtracted; reciprocal goes to the EUP).
    s = s - jnp.max(s, axis=-1, keepdims=True)
    e = jnp.exp(s)
    p = (e * pl.reciprocal(jnp.sum(e, axis=-1, keepdims=True))).astype(cdt)

    # 4) Attention output, still head-batched.
    o = jnp.einsum("hmt,htd->hmd", p, v_ref[...],
                   preferred_element_type=jnp.float32).astype(cdt)        # (H, TM, hd)

    # 5) Head merge fused into the output projection: accumulate H lane-dense
    #    (TM, hd) @ (hd, C) MXU products into one (TM, C) f32 accumulator
    #    (Wproj pre-laid-out as (H, hd, C)) — no lane slicing, no concat.
    acc = jnp.zeros((tm, C), jnp.float32)
    for h in range(num_heads):             # static unroll, H is small
        acc = acc + jnp.dot(o[h], wp_ref[h], preferred_element_type=jnp.float32)

    # 6) Bias add + one lane-dense (TM, C) store.
    o_ref[...] = (acc + bp_ref[...].astype(jnp.float32)).astype(o_ref.dtype)


def cross_attention_text_proj(x, text_features, params, *, num_heads=8, qk_scale=None,
                              block_m=128, compute_dtype=jnp.bfloat16):
    """x: (B, C), text_features: (T, C) -> (B, 1, C)   (matches the PyTorch module)."""
    B, C = x.shape
    T = text_features.shape[0]
    assert C % num_heads == 0, "dim must be divisible by num_heads"
    hd = C // num_heads
    scale = float(qk_scale) if qk_scale is not None else hd ** (-0.5)
    out_dtype = x.dtype
    cdt = compute_dtype if compute_dtype is not None else x.dtype
    f32 = jnp.float32

    wq = params["wq"].astype(f32)          # (C, C)   nn.Linear(dim, dim, bias=False)
    wkv = params["wkv"].astype(f32)        # (2C, C)  nn.Linear(dim, 2*dim, bias=False)
    wp = params["wp"].astype(f32)          # (C, C)   nn.Linear(dim, dim)
    bp = params["bp"].astype(f32)          # (C,)

    # ---- batch-independent host prep (hoisted out of the kernel, done once) -------
    wq_h = (wq.T * scale).reshape(C, num_heads, hd).transpose(1, 0, 2).astype(cdt)  # (H, C, hd)
    k = text_features.astype(f32) @ wkv[:C].T                                       # (T, C)
    v = text_features.astype(f32) @ wkv[C:].T                                       # (T, C)
    k_h = k.reshape(T, num_heads, hd).transpose(1, 0, 2).astype(cdt)                # (H, T, hd)
    v_h = v.reshape(T, num_heads, hd).transpose(1, 0, 2).astype(cdt)                # (H, T, hd)
    wp_h = wp.T.reshape(num_heads, hd, C).astype(cdt)                               # (H, hd, C)
    bp2 = bp.reshape(1, C).astype(cdt)                                              # (1, C)

    # ---- batch tiling: lane-dense (TM, C) slabs of query rows per grid step -------
    tm = min(block_m, B)
    b_pad = ((B + tm - 1) // tm) * tm
    xc = x.astype(cdt)
    if b_pad != B:
        xc = jnp.pad(xc, ((0, b_pad - B), (0, 0)))   # padded rows are sliced off below

    kernel = functools.partial(_cross_attn_kernel, num_heads=num_heads)
    out = pl.pallas_call(
        kernel,
        out_shape=jax.ShapeDtypeStruct((b_pad, C), out_dtype),
        grid_spec=pl.GridSpec(
            grid=(b_pad // tm,),
            in_specs=[
                pl.BlockSpec((tm, C), lambda b: (b, 0)),                   # x slab
                pl.BlockSpec((num_heads, C, hd), lambda b: (0, 0, 0)),     # Wq (scaled)
                pl.BlockSpec((num_heads, T, hd), lambda b: (0, 0, 0)),     # K
                pl.BlockSpec((num_heads, T, hd), lambda b: (0, 0, 0)),     # V
                pl.BlockSpec((num_heads, hd, C), lambda b: (0, 0, 0)),     # Wproj
                pl.BlockSpec((1, C), lambda b: (0, 0)),                    # proj bias
            ],
            out_specs=pl.BlockSpec((tm, C), lambda b: (b, 0)),
        ),
        compiler_params=pltpu.CompilerParams(
            dimension_semantics=("parallel",),
            # 64 MiB scoped VMEM: within v5e/v6e (128 MiB) and v7x (64 MiB); bf16
            # weights + K/V + (TM, C) slabs fit comfortably for production dims.
            vmem_limit_bytes=64 * 1024 * 1024,
        ),
    )(xc, wq_h, k_h, v_h, wp_h, bp2)

    return out[:B].reshape(B, 1, C)


def _reference(x, text, params, num_heads=8):
    """Pure-JAX replica of the PyTorch forward (eval mode)."""
    B, C = x.shape
    hd = C // num_heads
    scale = hd ** (-0.5)
    q = (x @ params["wq"].T).reshape(B, num_heads, hd)          # (B, H, hd)
    kv = text @ params["wkv"].T                                  # (T, 2C)
    k = kv[:, :C].reshape(-1, num_heads, hd)                     # (T, H, hd)
    v = kv[:, C:].reshape(-1, num_heads, hd)                     # (T, H, hd)
    s = jnp.einsum("bhd,thd->bht", q, k) * scale
    p = jax.nn.softmax(s, axis=-1)
    o = jnp.einsum("bht,thd->bhd", p, v).reshape(B, 1, C)
    return o @ params["wp"].T + params["bp"]


if __name__ == "__main__":
    B, C, T, H = 2, 32, 8, 8            # batch, dim, num text tokens, heads
    key = jax.random.PRNGKey(0)
    k1, k2, k3, k4, k5, k6 = jax.random.split(key, 6)

    x = jax.random.normal(k1, (B, C), jnp.float32)
    text_features = jax.random.normal(k2, (T, C), jnp.float32)
    params = {
        "wq": jax.random.normal(k3, (C, C), jnp.float32) * 0.05,       # qq: Linear(dim, dim, bias=False)
        "wkv": jax.random.normal(k4, (2 * C, C), jnp.float32) * 0.05,  # kv: Linear(dim, 2*dim, bias=False)
        "wp": jax.random.normal(k5, (C, C), jnp.float32) * 0.05,       # proj: Linear(dim, dim)
        "bp": jax.random.normal(k6, (C,), jnp.float32) * 0.05,
    }

    ref = _reference(x, text_features, params, num_heads=H)

    # f32 compute path: tight check against the pure-JAX reference.
    out_f32 = jax.block_until_ready(
        cross_attention_text_proj(x, text_features, params, num_heads=H,
                                  compute_dtype=jnp.float32))
    assert out_f32.shape == (B, 1, C), out_f32.shape
    assert jnp.allclose(out_f32, ref, atol=1e-4, rtol=1e-4), float(jnp.abs(out_f32 - ref).max())

    # Default bf16 operand path (f32 accumulation): looser numerical check.
    out_bf16 = jax.block_until_ready(
        cross_attention_text_proj(x, text_features, params, num_heads=H))
    assert out_bf16.shape == (B, 1, C), out_bf16.shape
    assert jnp.allclose(out_bf16, ref, atol=5e-2, rtol=5e-2), float(jnp.abs(out_bf16 - ref).max())

    print("KERNEL_OK")
</pallas_src>

<mosaic_0001>
module attributes {stable_mosaic.version = 11 : i64} {
  func.func @_cross_attn_kernel(%arg0: i32, %arg1: memref<2x32xf32, #tpu.memory_space<vmem>>, %arg2: memref<8x32x4xf32, #tpu.memory_space<vmem>>, %arg3: memref<8x8x4xf32, #tpu.memory_space<vmem>>, %arg4: memref<8x8x4xf32, #tpu.memory_space<vmem>>, %arg5: memref<8x4x32xf32, #tpu.memory_space<vmem>>, %arg6: memref<1x32xf32, #tpu.memory_space<vmem>>, %arg7: memref<2x32xf32, #tpu.memory_space<vmem>>) attributes {dimension_semantics = [#tpu.dimension_semantics<parallel>], iteration_bounds = array<i64: 1>, scalar_prefetch = 0 : i64, scratch_operands = 0 : i64, tpu.core_type = #tpu.core_type<tc>, window_params = [{transform_indices = @transform_0, window_bounds = array<i64: 2, 32>}, {pipeline_mode = #tpu.pipeline_mode<synchronous>, transform_indices = @transform_1, window_bounds = array<i64: 8, 32, 4>}, {pipeline_mode = #tpu.pipeline_mode<synchronous>, transform_indices = @transform_2, window_bounds = array<i64: 8, 8, 4>}, {pipeline_mode = #tpu.pipeline_mode<synchronous>, transform_indices = @transform_3, window_bounds = array<i64: 8, 8, 4>}, {pipeline_mode = #tpu.pipeline_mode<synchronous>, transform_indices = @transform_4, window_bounds = array<i64: 8, 4, 32>}, {pipeline_mode = #tpu.pipeline_mode<synchronous>, transform_indices = @transform_5, window_bounds = array<i64: 1, 32>}, {transform_indices = @transform_6, window_bounds = array<i64: 2, 32>}]} {
    %c0 = arith.constant 0 : index
    %c0_0 = arith.constant 0 : index
    %0 = vector.load %arg1[%c0, %c0_0] : memref<2x32xf32, #tpu.memory_space<vmem>>, vector<2x32xf32>
    %1 = vector.shape_cast %0 : vector<2x32xf32> to vector<1x2x32xf32>
    %2 = vector.broadcast %1 : vector<1x2x32xf32> to vector<8x2x32xf32>
    %c0_1 = arith.constant 0 : index
    %c0_2 = arith.constant 0 : index
    %c0_3 = arith.constant 0 : index
    %3 = vector.load %arg2[%c0_1, %c0_2, %c0_3] : memref<8x32x4xf32, #tpu.memory_space<vmem>>, vector<8x32x4xf32>
    "tpu.trace_start"() <{level = 10 : i32, message = "hmc,hcd->hmd"}> : () -> ()
    %cst = arith.constant dense<0.000000e+00> : vector<8x2x4xf32>
    %4 = tpu.matmul %2, %3, %cst {dimension_numbers = #tpu.dot_dimension_numbers<[2], [1], [1], [2], [0, 0, 0, 1, 1, 2], [0], [0]>} : vector<8x2x32xf32>, vector<8x32x4xf32>, vector<8x2x4xf32> -> vector<8x2x4xf32>
    "tpu.trace_stop"() : () -> ()
    %c0_4 = arith.constant 0 : index
    %c0_5 = arith.constant 0 : index
    %c0_6 = arith.constant 0 : index
    %5 = vector.load %arg3[%c0_4, %c0_5, %c0_6] : memref<8x8x4xf32, #tpu.memory_space<vmem>>, vector<8x8x4xf32>
    "tpu.trace_start"() <{level = 10 : i32, message = "hmd,htd->hmt"}> : () -> ()
    %cst_7 = arith.constant dense<0.000000e+00> : vector<8x2x8xf32>
    %6 = tpu.matmul %4, %5, %cst_7 {dimension_numbers = #tpu.dot_dimension_numbers<[2], [2], [1], [1], [0, 0, 0, 1, 1, 1], [0], [0]>} : vector<8x2x4xf32>, vector<8x8x4xf32>, vector<8x2x8xf32> -> vector<8x2x8xf32>
    "tpu.trace_stop"() : () -> ()
    %cst_8 = arith.constant dense<0xFF800000> : vector<8x2xf32>
    %7 = vector.multi_reduction <maximumf>, %6, %cst_8 [2] : vector<8x2x8xf32> to vector<8x2xf32>
    %8 = vector.shape_cast %7 : vector<8x2xf32> to vector<8x2x1xf32>
    %9 = vector.broadcast %8 : vector<8x2x1xf32> to vector<8x2x8xf32>
    %10 = arith.subf %6, %9 : vector<8x2x8xf32>
    %11 = math.exp %10 : vector<8x2x8xf32>
    %cst_9 = arith.constant dense<0.000000e+00> : vector<8x2xf32>
    %12 = vector.multi_reduction <add>, %11, %cst_9 [2] : vector<8x2x8xf32> to vector<8x2xf32>
    %13 = vector.shape_cast %12 : vector<8x2xf32> to vector<8x2x1xf32>
    %14 = tpu.reciprocal %13 : vector<8x2x1xf32> -> vector<8x2x1xf32>
    %15 = vector.broadcast %14 : vector<8x2x1xf32> to vector<8x2x8xf32>
    %16 = arith.mulf %11, %15 : vector<8x2x8xf32>
    %c0_10 = arith.constant 0 : index
    %c0_11 = arith.constant 0 : index
    %c0_12 = arith.constant 0 : index
    %17 = vector.load %arg4[%c0_10, %c0_11, %c0_12] : memref<8x8x4xf32, #tpu.memory_space<vmem>>, vector<8x8x4xf32>
    "tpu.trace_start"() <{level = 10 : i32, message = "hmt,htd->hmd"}> : () -> ()
    %cst_13 = arith.constant dense<0.000000e+00> : vector<8x2x4xf32>
    %18 = tpu.matmul %16, %17, %cst_13 {dimension_numbers = #tpu.dot_dimension_numbers<[2], [1], [1], [2], [0, 0, 0, 1, 1, 2], [0], [0]>} : vector<8x2x8xf32>, vector<8x8x4xf32>, vector<8x2x4xf32> -> vector<8x2x4xf32>
    %cst_14 = arith.constant 0.000000e+00 : f32
    "tpu.trace_stop"() : () -> ()
    %19 = vector.broadcast %cst_14 : f32 to vector<2x32xf32>
    %20 = vector.extract_strided_slice %18 {offsets = [0, 0, 0], sizes = [1, 2, 4], strides = [1, 1, 1]} : vector<8x2x4xf32> to vector<1x2x4xf32>
    %21 = vector.shape_cast %20 : vector<1x2x4xf32> to vector<2x4xf32>
    %c0_15 = arith.constant 0 : index
    %c0_16 = arith.constant 0 : index
    %c0_17 = arith.constant 0 : index
    %22 = vector.load %arg5[%c0_15, %c0_16, %c0_17] : memref<8x4x32xf32, #tpu.memory_space<vmem>>, vector<1x4x32xf32>
    %23 = vector.shape_cast %22 : vector<1x4x32xf32> to vector<4x32xf32>
    %cst_18 = arith.constant dense<0.000000e+00> : vector<2x32xf32>
    %24 = tpu.matmul %21, %23, %cst_18 {dimension_numbers = #tpu.dot_dimension_numbers<[1], [0], [0], [1], [0, 0, 1, 1], [], []>} : vector<2x4xf32>, vector<4x32xf32>, vector<2x32xf32> -> vector<2x32xf32>
    %25 = arith.addf %19, %24 : vector<2x32xf32>
    %26 = vector.extract_strided_slice %18 {offsets = [1, 0, 0], sizes = [1, 2, 4], strides = [1, 1, 1]} : vector<8x2x4xf32> to vector<1x2x4xf32>
    %27 = vector.shape_cast %26 : vector<1x2x4xf32> to vector<2x4xf32>
    %c1 = arith.constant 1 : index
    %c0_19 = arith.constant 0 : index
    %c0_20 = arith.constant 0 : index
    %28 = vector.load %arg5[%c1, %c0_19, %c0_20] : memref<8x4x32xf32, #tpu.memory_space<vmem>>, vector<1x4x32xf32>
    %29 = vector.shape_cast %28 : vector<1x4x32xf32> to vector<4x32xf32>
    %cst_21 = arith.constant dense<0.000000e+00> : vector<2x32xf32>
    %30 = tpu.matmul %27, %29, %cst_21 {dimension_numbers = #tpu.dot_dimension_numbers<[1], [0], [0], [1], [0, 0, 1, 1], [], []>} : vector<2x4xf32>, vector<4x32xf32>, vector<2x32xf32> -> vector<2x32xf32>
    %31 = arith.addf %25, %30 : vector<2x32xf32>
    %32 = vector.extract_strided_slice %18 {offsets = [2, 0, 0], sizes = [1, 2, 4], strides = [1, 1, 1]} : vector<8x2x4xf32> to vector<1x2x4xf32>
    %33 = vector.shape_cast %32 : vector<1x2x4xf32> to vector<2x4xf32>
    %c2 = arith.constant 2 : index
    %c0_22 = arith.constant 0 : index
    %c0_23 = arith.constant 0 : index
    %34 = vector.load %arg5[%c2, %c0_22, %c0_23] : memref<8x4x32xf32, #tpu.memory_space<vmem>>, vector<1x4x32xf32>
    %35 = vector.shape_cast %34 : vector<1x4x32xf32> to vector<4x32xf32>
    %cst_24 = arith.constant dense<0.000000e+00> : vector<2x32xf32>
    %36 = tpu.matmul %33, %35, %cst_24 {dimension_numbers = #tpu.dot_dimension_numbers<[1], [0], [0], [1], [0, 0, 1, 1], [], []>} : vector<2x4xf32>, vector<4x32xf32>, vector<2x32xf32> -> vector<2x32xf32>
    %37 = arith.addf %31, %36 : vector<2x32xf32>
    %38 = vector.extract_strided_slice %18 {offsets = [3, 0, 0], sizes = [1, 2, 4], strides = [1, 1, 1]} : vector<8x2x4xf32> to vector<1x2x4xf32>
    %39 = vector.shape_cast %38 : vector<1x2x4xf32> to vector<2x4xf32>
    %c3 = arith.constant 3 : index
    %c0_25 = arith.constant 0 : index
    %c0_26 = arith.constant 0 : index
    %40 = vector.load %arg5[%c3, %c0_25, %c0_26] : memref<8x4x32xf32, #tpu.memory_space<vmem>>, vector<1x4x32xf32>
    %41 = vector.shape_cast %40 : vector<1x4x32xf32> to vector<4x32xf32>
    %cst_27 = arith.constant dense<0.000000e+00> : vector<2x32xf32>
    %42 = tpu.matmul %39, %41, %cst_27 {dimension_numbers = #tpu.dot_dimension_numbers<[1], [0], [0], [1], [0, 0, 1, 1], [], []>} : vector<2x4xf32>, vector<4x32xf32>, vector<2x32xf32> -> vector<2x32xf32>
    %43 = arith.addf %37, %42 : vector<2x32xf32>
    %44 = vector.extract_strided_slice %18 {offsets = [4, 0, 0], sizes = [1, 2, 4], strides = [1, 1, 1]} : vector<8x2x4xf32> to vector<1x2x4xf32>
    %45 = vector.shape_cast %44 : vector<1x2x4xf32> to vector<2x4xf32>
    %c4 = arith.constant 4 : index
    %c0_28 = arith.constant 0 : index
    %c0_29 = arith.constant 0 : index
    %46 = vector.load %arg5[%c4, %c0_28, %c0_29] : memref<8x4x32xf32, #tpu.memory_space<vmem>>, vector<1x4x32xf32>
    %47 = vector.shape_cast %46 : vector<1x4x32xf32> to vector<4x32xf32>
    %cst_30 = arith.constant dense<0.000000e+00> : vector<2x32xf32>
    %48 = tpu.matmul %45, %47, %cst_30 {dimension_numbers = #tpu.dot_dimension_numbers<[1], [0], [0], [1], [0, 0, 1, 1], [], []>} : vector<2x4xf32>, vector<4x32xf32>, vector<2x32xf32> -> vector<2x32xf32>
    %49 = arith.addf %43, %48 : vector<2x32xf32>
    %50 = vector.extract_strided_slice %18 {offsets = [5, 0, 0], sizes = [1, 2, 4], strides = [1, 1, 1]} : vector<8x2x4xf32> to vector<1x2x4xf32>
    %51 = vector.shape_cast %50 : vector<1x2x4xf32> to vector<2x4xf32>
    %c5 = arith.constant 5 : index
    %c0_31 = arith.constant 0 : index
    %c0_32 = arith.constant 0 : index
    %52 = vector.load %arg5[%c5, %c0_31, %c0_32] : memref<8x4x32xf32, #tpu.memory_space<vmem>>, vector<1x4x32xf32>
    %53 = vector.shape_cast %52 : vector<1x4x32xf32> to vector<4x32xf32>
    %cst_33 = arith.constant dense<0.000000e+00> : vector<2x32xf32>
    %54 = tpu.matmul %51, %53, %cst_33 {dimension_numbers = #tpu.dot_dimension_numbers<[1], [0], [0], [1], [0, 0, 1, 1], [], []>} : vector<2x4xf32>, vector<4x32xf32>, vector<2x32xf32> -> vector<2x32xf32>
    %55 = arith.addf %49, %54 : vector<2x32xf32>
    %56 = vector.extract_strided_slice %18 {offsets = [6, 0, 0], sizes = [1, 2, 4], strides = [1, 1, 1]} : vector<8x2x4xf32> to vector<1x2x4xf32>
    %57 = vector.shape_cast %56 : vector<1x2x4xf32> to vector<2x4xf32>
    %c6 = arith.constant 6 : index
    %c0_34 = arith.constant 0 : index
    %c0_35 = arith.constant 0 : index
    %58 = vector.load %arg5[%c6, %c0_34, %c0_35] : memref<8x4x32xf32, #tpu.memory_space<vmem>>, vector<1x4x32xf32>
    %59 = vector.shape_cast %58 : vector<1x4x32xf32> to vector<4x32xf32>
    %cst_36 = arith.constant dense<0.000000e+00> : vector<2x32xf32>
    %60 = tpu.matmul %57, %59, %cst_36 {dimension_numbers = #tpu.dot_dimension_numbers<[1], [0], [0], [1], [0, 0, 1, 1], [], []>} : vector<2x4xf32>, vector<4x32xf32>, vector<2x32xf32> -> vector<2x32xf32>
    %61 = arith.addf %55, %60 : vector<2x32xf32>
    %62 = vector.extract_strided_slice %18 {offsets = [7, 0, 0], sizes = [1, 2, 4], strides = [1, 1, 1]} : vector<8x2x4xf32> to vector<1x2x4xf32>
    %63 = vector.shape_cast %62 : vector<1x2x4xf32> to vector<2x4xf32>
    %c7 = arith.constant 7 : index
    %c0_37 = arith.constant 0 : index
    %c0_38 = arith.constant 0 : index
    %64 = vector.load %arg5[%c7, %c0_37, %c0_38] : memref<8x4x32xf32, #tpu.memory_space<vmem>>, vector<1x4x32xf32>
    %65 = vector.shape_cast %64 : vector<1x4x32xf32> to vector<4x32xf32>
    %cst_39 = arith.constant dense<0.000000e+00> : vector<2x32xf32>
    %66 = tpu.matmul %63, %65, %cst_39 {dimension_numbers = #tpu.dot_dimension_numbers<[1], [0], [0], [1], [0, 0, 1, 1], [], []>} : vector<2x4xf32>, vector<4x32xf32>, vector<2x32xf32> -> vector<2x32xf32>
    %67 = arith.addf %61, %66 : vector<2x32xf32>
    %c0_40 = arith.constant 0 : index
    %c0_41 = arith.constant 0 : index
    %68 = vector.load %arg6[%c0_40, %c0_41] : memref<1x32xf32, #tpu.memory_space<vmem>>, vector<1x32xf32>
    %69 = vector.broadcast %68 : vector<1x32xf32> to vector<2x32xf32>
    %70 = arith.addf %67, %69 : vector<2x32xf32>
    %c0_42 = arith.constant 0 : index
    %c0_43 = arith.constant 0 : index
    %71 = vector.load %arg7[%c0_42, %c0_43] : memref<2x32xf32, #tpu.memory_space<vmem>>, vector<2x32xf32>
    tpu.vector_store %arg7[%c0_42, %c0_43], %70 {strides = array<i32>} : memref<2x32xf32, #tpu.memory_space<vmem>>, vector<2x32xf32>,
    return
  }
  func.func @transform_0(%arg0: i32) -> (i32, i32) {
    %c0_i32 = arith.constant 0 : i32
    %c0_i32_0 = arith.constant 0 : i32
    return %arg0, %c0_i32 : i32, i32
  }
  func.func @transform_1(%arg0: i32) -> (i32, i32, i32) {
    %c0_i32 = arith.constant 0 : i32
    %c0_i32_0 = arith.constant 0 : i32
    %c0_i32_1 = arith.constant 0 : i32
    %c0_i32_2 = arith.constant 0 : i32
    return %c0_i32, %c0_i32_0, %c0_i32_1 : i32, i32, i32
  }
  func.func @transform_2(%arg0: i32) -> (i32, i32, i32) {
    %c0_i32 = arith.constant 0 : i32
    %c0_i32_0 = arith.constant 0 : i32
    %c0_i32_1 = arith.constant 0 : i32
    %c0_i32_2 = arith.constant 0 : i32
    return %c0_i32, %c0_i32_0, %c0_i32_1 : i32, i32, i32
  }
  func.func @transform_3(%arg0: i32) -> (i32, i32, i32) {
    %c0_i32 = arith.constant 0 : i32
    %c0_i32_0 = arith.constant 0 : i32
    %c0_i32_1 = arith.constant 0 : i32
    %c0_i32_2 = arith.constant 0 : i32
    return %c0_i32, %c0_i32_0, %c0_i32_1 : i32, i32, i32
  }
  func.func @transform_4(%arg0: i32) -> (i32, i32, i32) {
    %c0_i32 = arith.constant 0 : i32
    %c0_i32_0 = arith.constant 0 : i32
    %c0_i32_1 = arith.constant 0 : i32
    %c0_i32_2 = arith.constant 0 : i32
    return %c0_i32, %c0_i32_0, %c0_i32_1 : i32, i32, i32
  }
  func.func @transform_5(%arg0: i32) -> (i32, i32) {
    %c0_i32 = arith.constant 0 : i32
    %c0_i32_0 = arith.constant 0 : i32
    %c0_i32_1 = arith.constant 0 : i32
    return %c0_i32, %c0_i32_0 : i32, i32
  }
  func.func @transform_6(%arg0: i32) -> (i32, i32) {
    %c0_i32 = arith.constant 0 : i32
    %c0_i32_0 = arith.constant 0 : i32
    return %arg0, %c0_i32 : i32, i32
  }
}

</mosaic_0001>

<bundles_post_ra>
// kernel: tpu_custom_call.1
= control target key start
LH: loop header
LB: loop body
LE: loop exit
PB: predicated region body
PF: predicated region fallthrough
CT: control target
= control target key end

     0   :  { %11 = vsyncpa [#allocation3], 0  ;;  %s3595_s0 = inlined_call_operand.hbm [shape: f32[2,32], index: 0, kind: input, shape index: {}]   ;;  %s3596_s1 = inlined_call_operand.hbm [shape: f32[8,32,4], index: 1, kind: input, shape index: {}]   ;;  %s3597_s2 = inlined_call_operand.hbm [shape: f32[8,8,4], index: 2, kind: input, shape index: {}]   ;;  %s3598_s3 = inlined_call_operand.hbm [shape: f32[8,8,4], index: 3, kind: input, shape index: {}]   ;;  %s3599_s4 = inlined_call_operand.hbm [shape: f32[8,4,32], index: 4, kind: input, shape index: {}]   ;;  %s3600_s5 = inlined_call_operand.hbm [shape: f32[1,32], index: 5, kind: input, shape index: {}]   ;;  %s3601_s6 = inlined_call_operand.hbm [shape: f32[2,32], index: 6, kind: output, shape index: {}]  }
   0x1   :  { %12 = vsyncpa [#allocation6], 0 }
   0x2   :  { %13 = vsyncpa [#allocation9], 0 }
   0x3   :  { %14 = vsyncpa [#allocation12], 0 }
   0x4   :  { %15 = vsyncpa [#allocation4], 0  ;;  %s3259_s21 = smov [#allocation5]   ;;  %s3095_s25 = scalar_lea.hbm %s3596_s1, 4096 }
   0x5   :  { %s31_s22 = sshll.u32 %s3259_s21, 4  ;;  %p3096_p0 = scmp.ne.s32.totalorder %s3596_s1, %s3095_s25  ;;  %s32_s22 = int_to_ptr.vmem [resolvable:$true] %s31_s22 }
   0x6   :  { %p3099_p1 = scmp.lt.u32.totalorder %s3095_s25, %s3596_s1 }
   0x8   :  { %p3101_p2 = pnand %p3099_p1, %p3096_p0 }
   0xa   :  { %3104 = shalt.err (!%p3101_p2)
}
   0xb   :  { %s3105_s30 = scalar_lea.vmem %s32_s22, 4096  ;;  %p3110_p4 = scmp.lt.s32.totalorder %s32_s22, %s32_s22 }
   0xc   :  { %p3106_p3 = scmp.ne.s32.totalorder %s32_s22, %s3105_s30  ;;  %p3111_p5 = scmp.lt.s32.totalorder %s3105_s30, %s3105_s30 }
   0xe   :  { %p3112_p6 = por %p3111_p5, %p3110_p4 }
  0x10   :  { %p3113_p7 = pnand %p3112_p6, %p3106_p3 }
  0x12   :  { %3116 = shalt.err (!%p3113_p7)
}
  0x13   :  { %s3260_s7 = smov 128   ;;  %s3261_s8 = smov 8  }
  0x14   :  { %37 = dma.hbm_to_vmem [thread:$0]  %s3596_s1, 4096, %s32_s22, [#allocation6], %s3260_s7, %s3260_s7, %s3261_s8  }
  0x15   :  { %s3262_s11 = smov [#allocation8]   ;;  %s3263_s13 = smov [#allocation2]  }
  0x16   :  { %s55_s12 = sshll.u32 %s3262_s11, 4  ;;  %s22_s14 = sshll.u32 %s3263_s13, 4  ;;  %s56_s12 = int_to_ptr.vmem [resolvable:$true] %s55_s12  ;;  %s23_s14 = int_to_ptr.vmem [resolvable:$true] %s22_s14 }
  0x17   :  { %s3117_s17 = scalar_lea.hbm %s3598_s3, 1024 }
  0x18   :  { %p3118_p8 = scmp.ne.s32.totalorder %s3598_s3, %s3117_s17  ;;  %p3121_p9 = scmp.lt.u32.totalorder %s3117_s17, %s3598_s3 }
  0x1a   :  { %p3123_p10 = pnand %p3121_p9, %p3118_p8 }
  0x1c   :  { %3126 = shalt.err (!%p3123_p10)
}
  0x1d   :  { %s3127_s1 = scalar_lea.vmem %s56_s12, 1024  ;;  %p3132_p12 = scmp.lt.s32.totalorder %s56_s12, %s56_s12 }
  0x1e   :  { %p3128_p11 = scmp.ne.s32.totalorder %s56_s12, %s3127_s1  ;;  %p3133_p13 = scmp.lt.s32.totalorder %s3127_s1, %s3127_s1 }
  0x20   :  { %p3134_p0 = por %p3133_p13, %p3132_p12 }
  0x22   :  { %p3135_p1 = pnand %p3134_p0, %p3128_p11 }
  0x24   :  { %3138 = shalt.err (!%p3135_p1)
}
  0x25   :  { %61 = dma.hbm_to_vmem [thread:$0]  %s3598_s3, 1024, %s56_s12, [#allocation9], %s3260_s7, %s3260_s7, %s3261_s8  }
  0x26   :  { %s3139_s26 = scalar_lea.hbm %s3595_s0, 32 }
  0x27   :  { %p3140_p2 = scmp.ne.s32.totalorder %s3595_s0, %s3139_s26  ;;  %p3143_p3 = scmp.lt.u32.totalorder %s3139_s26, %s3595_s0 }
  0x29   :  { %p3145_p4 = pnand %p3143_p3, %p3140_p2 }
  0x2b   :  { %3148 = shalt.err (!%p3145_p4)
}
  0x2c   :  { %s3149_s9 = scalar_lea.vmem %s23_s14, 32  ;;  %p3154_p6 = scmp.lt.s32.totalorder %s23_s14, %s23_s14 }
  0x2d   :  { %p3150_p5 = scmp.ne.s32.totalorder %s23_s14, %s3149_s9  ;;  %p3155_p7 = scmp.lt.s32.totalorder %s3149_s9, %s3149_s9 }
  0x2f   :  { %p3156_p8 = por %p3155_p7, %p3154_p6 }
  0x31   :  { %p3157_p9 = pnand %p3156_p8, %p3150_p5 }
  0x33   :  { %3160 = shalt.err (!%p3157_p9)
}
  0x34   :  { %25 = dma.hbm_to_vmem [thread:$0]  %s3595_s0, 32, %s23_s14, [#allocation3]  }
  0x35   :  { %s3264_s11 = smov [#allocation7]   ;;  %s3265_s13 = smov [#allocation10]  }
  0x36   :  { %s43_s12 = sshll.u32 %s3264_s11, 4  ;;  %s67_s15 = sshll.u32 %s3265_s13, 4  ;;  %s44_s12 = int_to_ptr.vmem [resolvable:$true] %s43_s12  ;;  %s68_s15 = int_to_ptr.vmem [resolvable:$true] %s67_s15 }
  0x37   :  { %s3161_s18 = scalar_lea.hbm %s3597_s2, 1024 }
  0x38   :  { %p3162_p10 = scmp.ne.s32.totalorder %s3597_s2, %s3161_s18  ;;  %p3165_p11 = scmp.lt.u32.totalorder %s3161_s18, %s3597_s2 }
  0x3a   :  { %p3167_p12 = pnand %p3165_p11, %p3162_p10 }
  0x3c   :  { %3170 = shalt.err (!%p3167_p12)
}
  0x3d   :  { %s3171_s0 = scalar_lea.vmem %s44_s12, 1024  ;;  %p3176_p0 = scmp.lt.s32.totalorder %s44_s12, %s44_s12 }
  0x3e   :  { %p3172_p13 = scmp.ne.s32.totalorder %s44_s12, %s3171_s0  ;;  %p3177_p1 = scmp.lt.s32.totalorder %s3171_s0, %s3171_s0 }
  0x40   :  { %p3178_p2 = por %p3177_p1, %p3176_p0 }
  0x42   :  { %p3179_p3 = pnand %p3178_p2, %p3172_p13 }
  0x44   :  { %3182 = shalt.err (!%p3179_p3)
}
  0x45   :  { %49 = dma.hbm_to_vmem [thread:$0]  %s3597_s2, 1024, %s44_s12, [#allocation6], %s3260_s7, %s3260_s7, %s3261_s8  }
  0x46   :  { %s3183_s25 = scalar_lea.hbm %s3599_s4, 512 }
  0x47   :  { %p3184_p4 = scmp.ne.s32.totalorder %s3599_s4, %s3183_s25  ;;  %p3187_p5 = scmp.lt.u32.totalorder %s3183_s25, %s3599_s4 }
  0x49   :  { %p3189_p6 = pnand %p3187_p5, %p3184_p4 }
  0x4b   :  { %3192 = shalt.err (!%p3189_p6)
}
  0x4c   :  { %s3193_s30 = scalar_lea.vmem %s68_s15, 512  ;;  %p3198_p8 = scmp.lt.s32.totalorder %s68_s15, %s68_s15 }
  0x4d   :  { %p3194_p7 = scmp.ne.s32.totalorder %s68_s15, %s3193_s30  ;;  %p3199_p9 = scmp.lt.s32.totalorder %s3193_s30, %s3193_s30 }
  0x4f   :  { %p3200_p10 = por %p3199_p9, %p3198_p8 }
  0x51   :  { %p3201_p11 = pnand %p3200_p10, %p3194_p7 }
  0x53   :  { %3204 = shalt.err (!%p3201_p11)
}
  0x54   :  { %s3266_s2 = smov 64   ;;  %s3267_s7 = smov 4  }
  0x55   :  { %73 = dma.hbm_to_vmem [thread:$0]  %s3599_s4, 512, %s68_s15, [#allocation9], %s3266_s2, %s3266_s2, %s3267_s7  }
  0x56   :  { %s3268_s3 = smov [#allocation11]   ;;  %s3205_s13 = scalar_lea.hbm %s3600_s5, 16 }
  0x57   :  { %s80_s10 = sshll.u32 %s3268_s3, 4  ;;  %p3206_p12 = scmp.ne.s32.totalorder %s3600_s5, %s3205_s13  ;;  %s81_s10 = int_to_ptr.vmem [resolvable:$true] %s80_s10 }
  0x58   :  { %p3209_p13 = scmp.lt.u32.totalorder %s3205_s13, %s3600_s5 }
  0x5a   :  { %p3211_p0 = pnand %p3209_p13, %p3206_p12 }
  0x5c   :  { %3214 = shalt.err (!%p3211_p0)
}
  0x5d   :  { %s3215_s20 = scalar_lea.vmem %s81_s10, 16  ;;  %s3219_s4 = scalar_lea.vmem %s81_s10, 32 }
  0x5e   :  { %p3216_p1 = scmp.ne.s32.totalorder %s81_s10, %s3215_s20  ;;  %p3220_p2 = scmp.lt.s32.totalorder %s81_s10, %s81_s10 }
  0x5f   :  { %p3221_p3 = scmp.lt.s32.totalorder %s3219_s4, %s3215_s20 }
  0x61   :  { %p3222_p4 = por %p3221_p3, %p3220_p2 }
  0x63   :  { %p3223_p5 = pnand %p3222_p4, %p3216_p1 }
  0x65   :  { %3226 = shalt.err (!%p3223_p5)
}
  0x66   :  { %83 = dma.hbm_to_vmem [thread:$0]  %s3600_s5, 16, %s81_s10, [#allocation12]  }
  0x67   :  { %3249 = dma.done.wait [#allocation3], 32  }
  0x68   :  { %3250 = vsyncadd [#allocation3], 4294967264 }
  0x69   :  { %3251 = dma.done.wait [#allocation6], 5120  }
  0x6a   :  { %3252 = vsyncadd [#allocation6], 4294962176 }
  0x6b   :  { %3253 = dma.done.wait [#allocation9], 1536  }
  0x6c   :  { %3254 = vsyncadd [#allocation9], 4294965760 }
  0x6d   :  { %3255 = dma.done.wait [#allocation12], 16  }
  0x6e   :  { %3256 = vsyncadd [#allocation12], 4294967280  ;;  %v3269_v0 = vmov 0.0|0.0   ;;  %vm3270_vm0 = vmmov 0   ;;  %v3271_v1 = vmov 0.0   ;;  %v103_v2 = vld [vmem:[#allocation5] sm:$0xff] }
  0x6f   :  { %3001 = vmatprep.subr.bf16.mxu0 %v3269_v0  ;;  %3007 = vmatprep.subr.bf16.mxu1 %v3269_v0  ;;  %v104_v3 = vld [vmem:[#allocation5 + $0x8] sm:$0xff]  ;;  %v107_v4 = vld [vmem:[#allocation5 + $0x20] sm:$0xff]  ;;  %v105_v7 = vld [vmem:[#allocation5 + $0x10] sm:$0xff]  ;;  %vm135_vm1 = vcmask 261120   ;;  %vm707_vm2 = vcmask 31744   ;;  %vm1316_vm3 = vcmask 58368  }
  0x70   :  { %2801 = vmatprep.mubr.msk.f32.mxu0 %vm3270_vm0, %v3271_v1  ;;  %2812 = vmatprep.mubr.msk.f32.mxu1 %vm3270_vm0, %v3271_v1  ;;  %v3002_v5 = vpack.c.bf16 %v104_v3, %v103_v2  ;;  %v108_v6 = vld [vmem:[#allocation5 + $0x28] sm:$0xff]  ;;  %v106_v8 = vld [vmem:[#allocation5 + $0x18] sm:$0xff]  ;;  %v109_v10 = vld [vmem:[#allocation5 + $0x30] sm:$0xff]  ;;  %vm1413_vm4 = vcmask 64512   ;;  %vm2004_vm5 = vcmask 1043456   ;;  %s3272_s5 = smov [#allocation13]  }
  0x71   :  { %v3008_v9 = vpack.c.bf16 %v108_v6, %v107_v4  ;;  %v110_v11 = vld [vmem:[#allocation5 + $0x38] sm:$0xff]  ;;  %v3005_v12 = vpack.c.bf16 %v106_v8, %v105_v7  ;;  %v111_v14 = vld [vmem:[#allocation5 + $0x40] sm:$0xff]  ;;  %v112_v15 = vld [vmem:[#allocation5 + $0x48] sm:$0xff]  ;;  %s2644_s1 = sshll.u32 %s3272_s5, 4  ;;  %vm2636_vm6 = vcmask 254976   ;;  %s2645_s1 = int_to_ptr.vmem [resolvable:$true] %s2644_s1 }
  0x72   :  { %3003 = vmatpush3.bf16.msra.mxu0 %v3002_v5  ;;  %v3011_v13 = vpack.c.bf16 %v110_v11, %v109_v10  ;;  %v115_v16 = vld [vmem:[#allocation5 + $0x60] sm:$0xff]  ;;  %v116_v17 = vld [vmem:[#allocation5 + $0x68] sm:$0xff]  ;;  %v3397_v18 = vld [vmem:[#allocation2] sm:$0x3]  ;;  %v3014_v19 = vpack.c.bf16 %v112_v15, %v111_v14  ;;  %s3227_s0 = scalar_lea.vmem %s2645_s1, 32  ;;  %p3232_p7 = scmp.lt.s32.totalorder %s2645_s1, %s2645_s1 }
  0x73   :  { %3009 = vmatpush3.bf16.msra.mxu1 %v3008_v9  ;;  %3004 = vmatprep.subr.bf16.mxu0 %v3269_v0  ;;  %v3020_v20 = vpack.c.bf16 %v116_v17, %v115_v16  ;;  %v113_v21 = vld [vmem:[#allocation5 + $0x50] sm:$0xff]  ;;  %v114_v22 = vld [vmem:[#allocation5 + $0x58] sm:$0xff]  ;;  %v119_v27 = vld [vmem:[#allocation5 + $0x80] sm:$0xff]  ;;  %p3228_p6 = scmp.ne.s32.totalorder %s2645_s1, %s3227_s0  ;;  %p3233_p8 = scmp.lt.s32.totalorder %s3227_s0, %s3227_s0 }
  0x74   :  { %3010 = vmatprep.subr.bf16.mxu1 %v3269_v0  ;;  %v117_v23 = vld [vmem:[#allocation5 + $0x70] sm:$0xff]  ;;  %v118_v24 = vld [vmem:[#allocation5 + $0x78] sm:$0xff]  ;;  %v3017_v25 = vpack.c.bf16 %v114_v22, %v113_v21  ;;  %v120_v28 = vld [vmem:[#allocation5 + $0x88] sm:$0xff] }
  0x75   :  { %v3023_v26 = vpack.c.bf16 %v118_v24, %v117_v23  ;;  %v123_v29 = vld [vmem:[#allocation5 + $0xa0] sm:$0xff]  ;;  %v124_v30 = vld [vmem:[#allocation5 + $0xa8] sm:$0xff]  ;;  %v3026_v31 = vpack.c.bf16 %v120_v28, %v119_v27  ;;  %v121_v33 = vld [vmem:[#allocation5 + $0x90] sm:$0xff]  ;;  %p3234_p9 = por %p3233_p8, %p3232_p7 }
  0x76   :  { %3006 = vmatpush3.bf16.msra.mxu0 %v3005_v12  ;;  %v3032_v32 = vpack.c.bf16 %v124_v30, %v123_v29  ;;  %v122_v34 = vld [vmem:[#allocation5 + $0x98] sm:$0xff]  ;;  %v125_v35 = vld [vmem:[#allocation5 + $0xb0] sm:$0xff]  ;;  %v127_v39 = vld [vmem:[#allocation5 + $0xc0] sm:$0xff] }
  0x77   :  { %3012 = vmatpush3.bf16.msra.mxu1 %v3011_v13  ;;  %3013 = vmatprep.subr.bf16.mxu0 %v3269_v0  ;;  %v126_v36 = vld [vmem:[#allocation5 + $0xb8] sm:$0xff]  ;;  %v3029_v37 = vpack.c.bf16 %v122_v34, %v121_v33  ;;  %v128_v40 = vld [vmem:[#allocation5 + $0xc8] sm:$0xff]  ;;  %v131_v41 = vld [vmem:[#allocation5 + $0xe0] sm:$0xff]  ;;  %p3235_p10 = pnand %p3234_p9, %p3228_p6 }
  0x78   :  { %3019 = vmatprep.subr.bf16.mxu1 %v3269_v0  ;;  %v3035_v38 = vpack.c.bf16 %v126_v36, %v125_v35  ;;  %v132_v42 = vld [vmem:[#allocation5 + $0xe8] sm:$0xff]  ;;  %v3038_v43 = vpack.c.bf16 %v128_v40, %v127_v39  ;;  %v129_v45 = vld [vmem:[#allocation5 + $0xd0] sm:$0xff]  ;;  %v130_v46 = vld [vmem:[#allocation5 + $0xd8] sm:$0xff] }
  0x79   :  { %2802 = vmatmul.mubr.msk.f32.vlgmr.msra.gmra.mrb[0].mxu0 %vm135_vm1, %v3397_v18  ;;  %v3044_v44 = vpack.c.bf16 %v132_v42, %v131_v41  ;;  %v133_v47 = vld [vmem:[#allocation5 + $0xf0] sm:$0xff]  ;;  %v134_v48 = vld [vmem:[#allocation5 + $0xf8] sm:$0xff]  ;;  %v3041_v49 = vpack.c.bf16 %v130_v46, %v129_v45  ;;  %v699_v51 = vld [vmem:[#allocation7] sm:$0xff] }
  0x7a   :  { %2813 = vmatmul.mubr.msk.f32.vlgmr.msra.gmra.mrb[0].mxu1 %vm135_vm1, %v3397_v18  ;;  %3015 = vmatpush3.bf16.msra.mxu0 %v3014_v19  ;;  %v3047_v50 = vpack.c.bf16 %v134_v48, %v133_v47  ;;  %v700_v52 = vld [vmem:[#allocation7 + $0x8] sm:$0xff]  ;;  %v701_v53 = vld [vmem:[#allocation7 + $0x10] sm:$0xff]  ;;  %v702_v55 = vld [vmem:[#allocation7 + $0x18] sm:$0xff] }
  0x7b   :  { %3021 = vmatpush3.bf16.msra.mxu1 %v3020_v20  ;;  %3016 = vmatprep.subr.bf16.mxu0 %v3269_v0  ;;  %v703_v59 = vld [vmem:[#allocation7 + $0x20] sm:$0xff]  ;;  %v704_v61 = vld [vmem:[#allocation7 + $0x28] sm:$0xff]  ;;  %v705_v2 = vld [vmem:[#allocation7 + $0x30] sm:$0xff] }
  0x7c   :  { %3022 = vmatprep.subr.bf16.mxu1 %v3269_v0  ;;  %2823 = vmatprep.mubr.msk.f32.mxu0 %vm3270_vm0, %v3271_v1  ;;  %v706_v4 = vld [vmem:[#allocation7 + $0x38] sm:$0xff] }
  0x7d   :  { %2834 = vmatprep.mubr.msk.f32.mxu1 %vm3270_vm0, %v3271_v1 }
  0x7e   :  { %3018 = vmatpush3.bf16.msra.mxu0 %v3017_v25 }
  0x7f   :  { %3024 = vmatpush3.bf16.msra.mxu1 %v3023_v26  ;;  %3025 = vmatprep.subr.bf16.mxu0 %v3269_v0 }
  0x80   :  { %3031 = vmatprep.subr.bf16.mxu1 %v3269_v0 }
  0x81   :  { %2824 = vmatmul.mubr.msk.f32.vlgmr.msra.gmra.mrb[2].mxu0 %vm135_vm1, %v3397_v18 }
  0x82   :  { %2835 = vmatmul.mubr.msk.f32.vlgmr.msra.gmra.mrb[2].mxu1 %vm135_vm1, %v3397_v18  ;;  %3027 = vmatpush3.bf16.msra.mxu0 %v3026_v31 }
  0x83   :  { %3033 = vmatpush3.bf16.msra.mxu1 %v3032_v32  ;;  %3028 = vmatprep.subr.bf16.mxu0 %v3269_v0 }
  0x84   :  { %3034 = vmatprep.subr.bf16.mxu1 %v3269_v0  ;;  %2845 = vmatprep.mubr.msk.f32.mxu0 %vm3270_vm0, %v3271_v1 }
  0x85   :  { %2856 = vmatprep.mubr.msk.f32.mxu1 %vm3270_vm0, %v3271_v1 }
  0x86   :  { %3030 = vmatpush3.bf16.msra.mxu0 %v3029_v37 }
  0x87   :  { %3036 = vmatpush3.bf16.msra.mxu1 %v3035_v38  ;;  %3037 = vmatprep.subr.bf16.mxu0 %v3269_v0 }
  0x88   :  { %3043 = vmatprep.subr.bf16.mxu1 %v3269_v0 }
  0x89   :  { %2846 = vmatmul.mubr.msk.f32.vlgmr.msra.gmra.mrb[4].mxu0 %vm135_vm1, %v3397_v18 }
  0x8a   :  { %2857 = vmatmul.mubr.msk.f32.vlgmr.msra.gmra.mrb[4].mxu1 %vm135_vm1, %v3397_v18  ;;  %3039 = vmatpush3.bf16.msra.mxu0 %v3038_v43 }
  0x8b   :  { %3045 = vmatpush3.bf16.msra.mxu1 %v3044_v44  ;;  %3040 = vmatprep.subr.bf16.mxu0 %v3269_v0 }
  0x8c   :  { %3046 = vmatprep.subr.bf16.mxu1 %v3269_v0  ;;  %2867 = vmatprep.mubr.msk.f32.mxu0 %vm3270_vm0, %v3271_v1 }
  0x8d   :  { %2878 = vmatprep.mubr.msk.f32.mxu1 %vm3270_vm0, %v3271_v1 }
  0x8e   :  { %3042 = vmatpush3.bf16.msra.mxu0 %v3041_v49 }
  0x8f   :  { %3048 = vmatpush3.bf16.msra.mxu1 %v3047_v50  ;;  %2881 = vmatprep.subr.mxu0 %v3271_v1 }
  0x90   :  { %2886 = vmatprep.subr.mxu1 %v3271_v1 }
  0x91   :  { %2868 = vmatmul.mubr.msk.f32.vlgmr.msra.gmra.mrb[6].mxu0 %vm135_vm1, %v3397_v18 }
  0x92   :  { %2879 = vmatmul.mubr.msk.f32.vlgmr.msra.gmra.mrb[6].mxu1 %vm135_vm1, %v3397_v18  ;;  %2883 = vmatprep.mubr.msk.f32.mxu0 %vm3270_vm0, %v3271_v1 }
  0x93   :  { %2888 = vmatprep.mubr.msk.f32.mxu1 %vm3270_vm0, %v3271_v1 }
  0x97   :  { %2882 = vmatpush3.xpose.msk.msra.mxu0 %vm707_vm2, %v699_v51 }
  0x98   :  { %2891 = vmatprep.subr.mxu0 %v3271_v1  ;;  %2887 = vmatpush3.xpose.msk.msra.mxu1 %vm707_vm2, %v700_v52 }
  0x99   :  { %2896 = vmatprep.subr.mxu1 %v3271_v1 }
 0x14c   :  { %v205_v54 = vpop.f32.mrb[0].mxu0 }
 0x14d   :  { %v2803_v56 = vpop.f32.mrb[1].mxu0  ;;  %2884 = vmatmul.mubr.msk.f32.vlgmr.msra.gmra.mrb[8].mxu0 %vm707_vm2, %v205_v54  ;;  %v275_v57 = vpop.f32.mrb[0].mxu1 }
 0x14e   :  { %v2814_v58 = vpop.f32.mrb[1].mxu1  ;;  %2889 = vmatmul.mubr.msk.f32.vlgmr.msra.gmra.mrb[8].mxu1 %vm707_vm2, %v275_v57  ;;  %2892 = vmatpush3.xpose.msk.msra.mxu0 %vm707_vm2, %v701_v53 }
 0x14f   :  { %2893 = vmatprep.mubr.msk.f32.mxu0 %vm3270_vm0, %v3271_v1  ;;  %2897 = vmatpush3.xpose.msk.msra.mxu1 %vm707_vm2, %v702_v55 }
 0x150   :  { %2898 = vmatprep.mubr.msk.f32.mxu1 %vm3270_vm0, %v3271_v1  ;;  %2901 = vmatprep.subr.mxu0 %v3271_v1 }
 0x151   :  { %2906 = vmatprep.subr.mxu1 %v3271_v1 }
 0x154   :  { %v345_v60 = vpop.f32.mrb[2].mxu0 }
 0x155   :  { %v2825_v62 = vpop.f32.mrb[3].mxu0  ;;  %2894 = vmatmul.mubr.msk.f32.vlgmr.msra.gmra.mrb[10].mxu0 %vm707_vm2, %v345_v60  ;;  %v415_v63 = vpop.f32.mrb[2].mxu1 }
 0x156   :  { %v2836_v0 = vpop.f32.mrb[3].mxu1  ;;  %2899 = vmatmul.mubr.msk.f32.vlgmr.msra.gmra.mrb[10].mxu1 %vm707_vm2, %v415_v63  ;;  %2902 = vmatpush3.xpose.msk.msra.mxu0 %vm707_vm2, %v703_v59 }
 0x157   :  { %2907 = vmatpush3.xpose.msk.msra.mxu1 %vm707_vm2, %v704_v61  ;;  %2903 = vmatprep.mubr.msk.f32.mxu0 %vm3270_vm0, %v3271_v1 }
 0x158   :  { %2908 = vmatprep.mubr.msk.f32.mxu1 %vm3270_vm0, %v3271_v1  ;;  %2911 = vmatprep.subr.mxu0 %v3271_v1 }
 0x159   :  { %2916 = vmatprep.subr.mxu1 %v3271_v1 }
 0x15c   :  { %v485_v3 = vpop.f32.mrb[4].mxu0 }
 0x15d   :  { %v555_v5 = vpop.f32.mrb[4].mxu1  ;;  %v2847_v6 = vpop.f32.mrb[5].mxu0  ;;  %2904 = vmatmul.mubr.msk.f32.vlgmr.msra.gmra.mrb[12].mxu0 %vm707_vm2, %v485_v3 }
 0x15e   :  { %2909 = vmatmul.mubr.msk.f32.vlgmr.msra.gmra.mrb[12].mxu1 %vm707_vm2, %v555_v5  ;;  %v2858_v7 = vpop.f32.mrb[5].mxu1  ;;  %2912 = vmatpush3.xpose.msk.msra.mxu0 %vm707_vm2, %v705_v2 }
 0x15f   :  { %2917 = vmatpush3.xpose.msk.msra.mxu1 %vm707_vm2, %v706_v4  ;;  %2913 = vmatprep.mubr.msk.f32.mxu0 %vm3270_vm0, %v3271_v1 }
 0x160   :  { %2918 = vmatprep.mubr.msk.f32.mxu1 %vm3270_vm0, %v3271_v1  ;;  %2921 = vmatprep.subr.mxu0 %v3271_v1 }
 0x161   :  { %2926 = vmatprep.subr.mxu1 %v3271_v1 }
 0x164   :  { %v625_v8 = vpop.f32.mrb[6].mxu0 }
 0x165   :  { %v695_v9 = vpop.f32.mrb[6].mxu1  ;;  %v2869_v10 = vpop.f32.mrb[7].mxu0  ;;  %2914 = vmatmul.mubr.msk.f32.vlgmr.msra.gmra.mrb[14].mxu0 %vm707_vm2, %v625_v8 }
 0x166   :  { %2919 = vmatmul.mubr.msk.f32.vlgmr.msra.gmra.mrb[14].mxu1 %vm707_vm2, %v695_v9  ;;  %v2880_v11 = vpop.f32.mrb[7].mxu1  ;;  %2923 = vmatprep.mubr.msk.f32.mxu0 %vm3270_vm0, %v3271_v1 }
 0x167   :  { %2928 = vmatprep.mubr.msk.f32.mxu1 %vm3270_vm0, %v3271_v1 }
 0x220   :  { %v780_v12 = vpop.f32.mrb[8].mxu0 }
 0x221   :  { %v2885_v13 = vpop.f32.mrb[9].mxu0  ;;  %v856_v14 = vpop.f32.mrb[8].mxu1  ;;  %v1317_v15 = vsel %vm1316_vm3, %v780_v12, -inf }
 0x222   :  { %1318 = vmax.xlane.f32.xlu0 %v1317_v15  ;;  %v2890_v16 = vpop.f32.mrb[9].mxu1  ;;  %v1320_v17 = vsel %vm1316_vm3, %v856_v14, -inf  ;;  %v1405_v13 = vld [vmem:[#allocation8] sm:$0xff] }
 0x223   :  { %2922 = vmatpush3.msra.mxu0 %v1405_v13 }
 0x224   :  { %2931 = vmatprep.subr.mxu0 %v3271_v1 }
 0x226   :  { %1321 = vmax.xlane.f32.xlu0 %v1320_v17 }
 0x228   :  { %v932_v18 = vpop.f32.mrb[10].mxu0 }
 0x229   :  { %v2895_v19 = vpop.f32.mrb[11].mxu0  ;;  %v1008_v20 = vpop.f32.mrb[10].mxu1  ;;  %v1323_v21 = vsel %vm1316_vm3, %v932_v18, -inf }
 0x22a   :  { %1324 = vmax.xlane.f32.xlu1 %v1323_v21  ;;  %v2900_v22 = vpop.f32.mrb[11].mxu1  ;;  %v1326_v23 = vsel %vm1316_vm3, %v1008_v20, -inf  ;;  %v1407_v21 = vld [vmem:[#allocation8 + $0x10] sm:$0xff] }
 0x22e   :  { %1327 = vmax.xlane.f32.xlu1 %v1326_v23 }
 0x230   :  { %v1084_v24 = vpop.f32.mrb[12].mxu0 }
 0x231   :  { %v1160_v25 = vpop.f32.mrb[12].mxu1  ;;  %v2905_v26 = vpop.f32.mrb[13].mxu0  ;;  %v1329_v27 = vsel %vm1316_vm3, %v1084_v24, -inf }
 0x232   :  { %v1332_v28 = vsel %vm1316_vm3, %v1160_v25, -inf  ;;  %1330 = vmax.xlane.f32.xlu0 %v1329_v27  ;;  %v2910_v29 = vpop.f32.mrb[13].mxu1 }
 0x233   :  { %1333 = vmax.xlane.f32.xlu1 %v1332_v28  ;;  %v1409_v29 = vld [vmem:[#allocation8 + $0x20] sm:$0xff] }
 0x238   :  { %v1236_v30 = vpop.f32.mrb[14].mxu0 }
 0x239   :  { %v1312_v31 = vpop.f32.mrb[14].mxu1  ;;  %v2915_v32 = vpop.f32.mrb[15].mxu0  ;;  %v1335_v33 = vsel %vm1316_vm3, %v1236_v30, -inf }
 0x23a   :  { %v2920_v34 = vpop.f32.mrb[15].mxu1  ;;  %v1338_v35 = vsel %vm1316_vm3, %v1312_v31, -inf  ;;  %1336 = vmax.xlane.f32.xlu0 %v1335_v33  ;;  %v1410_v33 = vld [vmem:[#allocation8 + $0x28] sm:$0xff] }
 0x23b   :  { %1339 = vmax.xlane.f32.xlu1 %v1338_v35 }
 0x2af   :  { %v1319_v36 = vpop.xlane.xlu0 %1318 }
 0x2b0   :  { %v1341_v37 = vsub.f32 %v780_v12, %v1319_v36 }
 0x2b2   :  { %v1349_v38 = vmul.f32 1.442695, %v1341_v37 }
 0x2b3   :  { %v1322_v39 = vpop.xlane.xlu0 %1321 }
 0x2b4   :  { %3063 = vpow2.f32 %v1349_v38  ;;  %v1342_v40 = vsub.f32 %v856_v14, %v1322_v39  ;;  %v1406_v14 = vld [vmem:[#allocation8 + $0x8] sm:$0xff]  ;;  %v1411_v38 = vld [vmem:[#allocation8 + $0x30] sm:$0xff] }
 0x2b5   :  { %2927 = vmatpush3.msra.mxu1 %v1406_v14 }
 0x2b6   :  { %v1351_v41 = vmul.f32 1.442695, %v1342_v40  ;;  %2936 = vmatprep.subr.mxu1 %v3271_v1  ;;  %v1412_v40 = vld [vmem:[#allocation8 + $0x38] sm:$0xff] }
 0x2b7   :  { %v1325_v42 = vpop.xlane.xlu1 %1324 }
 0x2b8   :  { %3065 = vpow2.f32 %v1351_v41  ;;  %v1343_v43 = vsub.f32 %v932_v18, %v1325_v42 }
 0x2ba   :  { %v1353_v44 = vmul.f32 1.442695, %v1343_v43 }
 0x2bb   :  { %v1328_v45 = vpop.xlane.xlu1 %1327 }
 0x2bc   :  { %3067 = vpow2.f32 %v1353_v44  ;;  %v1344_v46 = vsub.f32 %v1008_v20, %v1328_v45  ;;  %v1998_v45 = vld [vmem:[#allocation10] sm:$0xf] }
 0x2be   :  { %v3064_v47 = vpop.eup %3063  ;;  %v1355_v48 = vmul.f32 1.442695, %v1344_v46  ;;  %v2000_v46 = vld [vmem:[#allocation10 + $0x4] sm:$0xf] }
 0x2bf   :  { %v1331_v49 = vpop.xlane.xlu0 %1330  ;;  %v1365_v50 = vsel %vm1316_vm3, %v3064_v47, 0.0 }
 0x2c0   :  { %3069 = vpow2.f32 %v1355_v48  ;;  %v1334_v51 = vpop.xlane.xlu1 %1333  ;;  %v1345_v52 = vsub.f32 %v1084_v24, %v1331_v49  ;;  %1366 = vadd.xlane.f32.xlu0 %v1365_v50  ;;  %v2155_v50 = vld [vmem:[#allocation10 + $0x8] sm:$0xf] }
 0x2c1   :  { %v1346_v53 = vsub.f32 %v1160_v25, %v1334_v51  ;;  %v1408_v25 = vld [vmem:[#allocation8 + $0x18] sm:$0xff] }
 0x2c2   :  { %v3066_v54 = vpop.eup %3065  ;;  %v1357_v55 = vmul.f32 1.442695, %v1345_v52 }
 0x2c3   :  { %v1359_v56 = vmul.f32 1.442695, %v1346_v53  ;;  %v1368_v57 = vsel %vm1316_vm3, %v3066_v54, 0.0  ;;  %v2313_v53 = vld [vmem:[#allocation10 + $0x10] sm:$0xf] }
 0x2c4   :  { %3071 = vpow2.f32 %v1357_v55  ;;  %1369 = vadd.xlane.f32.xlu1 %v1368_v57 }
 0x2c5   :  { %3073 = vpow2.f32 %v1359_v56  ;;  %v2392_v56 = vld [vmem:[#allocation10 + $0x14] sm:$0xf] }
 0x2c6   :  { %v3068_v58 = vpop.eup %3067 }
 0x2c7   :  { %v1337_v59 = vpop.xlane.xlu0 %1336  ;;  %v1371_v60 = vsel %vm1316_vm3, %v3068_v58, 0.0 }
 0x2c8   :  { %v1340_v61 = vpop.xlane.xlu1 %1339  ;;  %v1347_v62 = vsub.f32 %v1236_v30, %v1337_v59  ;;  %1372 = vadd.xlane.f32.xlu0 %v1371_v60  ;;  %v2471_v59 = vld [vmem:[#allocation10 + $0x18] sm:$0xf] }
 0x2c9   :  { %v1348_v63 = vsub.f32 %v1312_v31, %v1340_v61  ;;  %v2550_v61 = vld [vmem:[#allocation10 + $0x1c] sm:$0xf] }
 0x2ca   :  { %v3070_v0 = vpop.eup %3069  ;;  %v1361_v2 = vmul.f32 1.442695, %v1347_v62 }
 0x2cb   :  { %v1363_v3 = vmul.f32 1.442695, %v1348_v63  ;;  %v1374_v4 = vsel %vm1316_vm3, %v3070_v0, 0.0 }
 0x2cc   :  { %3075 = vpow2.f32 %v1361_v2  ;;  %1375 = vadd.xlane.f32.xlu1 %v1374_v4 }
 0x2cd   :  { %3077 = vpow2.f32 %v1363_v3 }
 0x2ce   :  { %v3497_v5 = vpop.eup %3071 }
 0x2cf   :  { %v3499_v6 = vpop.eup %3073  ;;  %v1377_v7 = vsel %vm1316_vm3, %v3497_v5, 0.0 }
 0x2d0   :  { %v1380_v8 = vsel %vm1316_vm3, %v3499_v6, 0.0  ;;  %1378 = vadd.xlane.f32.xlu0 %v1377_v7 }
 0x2d1   :  { %1381 = vadd.xlane.f32.xlu1 %v1380_v8 }
 0x2d6   :  { %v3505_v9 = vpop.eup %3075 }
 0x2d7   :  { %v3507_v10 = vpop.eup %3077  ;;  %v1383_v11 = vsel %vm1316_vm3, %v3505_v9, 0.0 }
 0x2d8   :  { %v1386_v12 = vsel %vm1316_vm3, %v3507_v10, 0.0  ;;  %1384 = vadd.xlane.f32.xlu0 %v1383_v11 }
 0x2d9   :  { %1387 = vadd.xlane.f32.xlu1 %v1386_v12 }
 0x34d   :  { %v1367_v15 = vpop.xlane.xlu0 %1366 }
 0x34e   :  { %3079 = vrcp.f32 %v1367_v15 }
 0x351   :  { %v1370_v16 = vpop.xlane.xlu1 %1369 }
 0x352   :  { %3081 = vrcp.f32 %v1370_v16 }
 0x355   :  { %v1373_v17 = vpop.xlane.xlu0 %1372 }
 0x356   :  { %3083 = vrcp.f32 %v1373_v17 }
 0x358   :  { %v3080_v18 = vpop.eup %3079 }
 0x359   :  { %v1397_v19 = vmul.f32 %v3080_v18, %v3064_v47  ;;  %v1376_v20 = vpop.xlane.xlu1 %1375  ;;  %v2234_v47 = vld [vmem:[#allocation10 + $0xc] sm:$0xf] }
 0x35a   :  { %3085 = vrcp.f32 %v1376_v20 }
 0x35b   :  { %2924 = vmatmul.mubr.msk.f32.vlgmr.msra.gmra.mrb[16].mxu0 %vm1413_vm4, %v1397_v19 }
 0x35c   :  { %v3082_v22 = vpop.eup %3081  ;;  %2932 = vmatpush3.msra.mxu0 %v1407_v21  ;;  %2933 = vmatprep.mubr.msk.f32.mxu0 %vm3270_vm0, %v3271_v1 }
 0x35d   :  { %v1398_v23 = vmul.f32 %v3082_v22, %v3066_v54  ;;  %v1379_v24 = vpop.xlane.xlu0 %1378  ;;  %2941 = vmatprep.subr.mxu0 %v3271_v1 }
 0x35e   :  { %v1382_v26 = vpop.xlane.xlu1 %1381  ;;  %3087 = vrcp.f32 %v1379_v24 }
 0x35f   :  { %3089 = vrcp.f32 %v1382_v26  ;;  %2929 = vmatmul.mubr.msk.f32.vlgmr.msra.gmra.mrb[16].mxu1 %vm1413_vm4, %v1398_v23  ;;  %v2704_v26 = vld [vmem:[#allocation11] ss:$0 sm:$0xff] }
 0x360   :  { %v3084_v27 = vpop.eup %3083  ;;  %2937 = vmatpush3.msra.mxu1 %v1408_v25  ;;  %2938 = vmatprep.mubr.msk.f32.mxu1 %vm3270_vm0, %v3271_v1 }
 0x361   :  { %v1399_v28 = vmul.f32 %v3084_v27, %v3068_v58  ;;  %2946 = vmatprep.subr.mxu1 %v3271_v1 }
 0x363   :  { %2934 = vmatmul.mubr.msk.f32.vlgmr.msra.gmra.mrb[18].mxu0 %vm1413_vm4, %v1399_v28 }
 0x364   :  { %v3086_v30 = vpop.eup %3085  ;;  %2942 = vmatpush3.msra.mxu0 %v1409_v29  ;;  %2943 = vmatprep.mubr.msk.f32.mxu0 %vm3270_vm0, %v3271_v1 }
 0x365   :  { %v1400_v31 = vmul.f32 %v3086_v30, %v3070_v0  ;;  %v1385_v32 = vpop.xlane.xlu0 %1384  ;;  %2951 = vmatprep.subr.mxu0 %v3271_v1 }
 0x366   :  { %v1388_v34 = vpop.xlane.xlu1 %1387  ;;  %3091 = vrcp.f32 %v1385_v32 }
 0x367   :  { %3093 = vrcp.f32 %v1388_v34  ;;  %2939 = vmatmul.mubr.msk.f32.vlgmr.msra.gmra.mrb[18].mxu1 %vm1413_vm4, %v1400_v31 }
 0x368   :  { %v3088_v35 = vpop.eup %3087  ;;  %2947 = vmatpush3.msra.mxu1 %v1410_v33  ;;  %2948 = vmatprep.mubr.msk.f32.mxu1 %vm3270_vm0, %v3271_v1 }
 0x369   :  { %v3090_v36 = vpop.eup %3089  ;;  %v1401_v37 = vmul.f32 %v3088_v35, %v3497_v5  ;;  %2956 = vmatprep.subr.mxu1 %v3271_v1 }
 0x36a   :  { %v1402_v39 = vmul.f32 %v3090_v36, %v3499_v6 }
 0x36b   :  { %2944 = vmatmul.mubr.msk.f32.vlgmr.msra.gmra.mrb[20].mxu0 %vm1413_vm4, %v1401_v37 }
 0x36c   :  { %2949 = vmatmul.mubr.msk.f32.vlgmr.msra.gmra.mrb[20].mxu1 %vm1413_vm4, %v1402_v39  ;;  %2952 = vmatpush3.msra.mxu0 %v1411_v38 }
 0x36d   :  { %2957 = vmatpush3.msra.mxu1 %v1412_v40  ;;  %2953 = vmatprep.mubr.msk.f32.mxu0 %vm3270_vm0, %v3271_v1 }
 0x36e   :  { %2958 = vmatprep.mubr.msk.f32.mxu1 %vm3270_vm0, %v3271_v1  ;;  %2966 = vmatprep.subr.mxu1 %v3271_v1 }
 0x36f   :  { %2961 = vmatprep.subr.mxu0 %v3271_v1 }
 0x370   :  { %v3092_v41 = vpop.eup %3091 }
 0x371   :  { %v3094_v42 = vpop.eup %3093  ;;  %v1403_v43 = vmul.f32 %v3092_v41, %v3505_v9 }
 0x372   :  { %v1404_v44 = vmul.f32 %v3094_v42, %v3507_v10 }
 0x373   :  { %2954 = vmatmul.mubr.msk.f32.vlgmr.msra.gmra.mrb[22].mxu0 %vm1413_vm4, %v1403_v43 }
 0x374   :  { %2959 = vmatmul.mubr.msk.f32.vlgmr.msra.gmra.mrb[22].mxu1 %vm1413_vm4, %v1404_v44  ;;  %2963 = vmatprep.mubr.msk.f32.mxu0 %vm3270_vm0, %v3271_v1 }
 0x375   :  { %2968 = vmatprep.mubr.msk.f32.mxu1 %vm3270_vm0, %v3271_v1  ;;  %2967 = vmatpush3.msk.msra.mxu1 %vm2004_vm5, %v1998_v45 }
 0x376   :  { %2976 = vmatprep.subr.mxu1 %v3271_v1  ;;  %2962 = vmatpush3.msk.msra.mxu0 %vm2004_vm5, %v2000_v46 }
 0x377   :  { %2971 = vmatprep.subr.mxu0 %v3271_v1 }
 0x42e   :  { %v1483_v48 = vpop.f32.mrb[16].mxu0 }
 0x42f   :  { %v2925_v49 = vpop.f32.mrb[17].mxu0  ;;  %2969 = vmatmul.mubr.msk.f32.vlgmr.msra.gmra.mrb[24].mxu1 %vm707_vm2, %v1483_v48 }
 0x430   :  { %2977 = vmatpush3.msk.msra.mxu1 %vm2004_vm5, %v2234_v47  ;;  %2978 = vmatprep.mubr.msk.f32.mxu1 %vm3270_vm0, %v3271_v1 }
 0x431   :  { %2986 = vmatprep.subr.mxu1 %v3271_v1 }
 0x432   :  { %v1556_v51 = vpop.f32.mrb[16].mxu1 }
 0x433   :  { %v2930_v52 = vpop.f32.mrb[17].mxu1  ;;  %2964 = vmatmul.mubr.msk.f32.vlgmr.msra.gmra.mrb[24].mxu0 %vm707_vm2, %v1556_v51 }
 0x434   :  { %2972 = vmatpush3.msk.msra.mxu0 %vm2004_vm5, %v2155_v50  ;;  %2973 = vmatprep.mubr.msk.f32.mxu0 %vm3270_vm0, %v3271_v1 }
 0x435   :  { %2981 = vmatprep.subr.mxu0 %v3271_v1 }
 0x436   :  { %v1629_v54 = vpop.f32.mrb[18].mxu0 }
 0x437   :  { %v2935_v55 = vpop.f32.mrb[19].mxu0  ;;  %2974 = vmatmul.mubr.msk.f32.vlgmr.msra.gmra.mrb[26].mxu0 %vm707_vm2, %v1629_v54 }
 0x438   :  { %2982 = vmatpush3.msk.msra.mxu0 %vm2004_vm5, %v2313_v53  ;;  %2983 = vmatprep.mubr.msk.f32.mxu0 %vm3270_vm0, %v3271_v1 }
 0x439   :  { %2991 = vmatprep.subr.mxu0 %v3271_v1 }
 0x43a   :  { %v1702_v57 = vpop.f32.mrb[18].mxu1 }
 0x43b   :  { %v2940_v58 = vpop.f32.mrb[19].mxu1  ;;  %2979 = vmatmul.mubr.msk.f32.vlgmr.msra.gmra.mrb[26].mxu1 %vm707_vm2, %v1702_v57 }
 0x43c   :  { %2987 = vmatpush3.msk.msra.mxu1 %vm2004_vm5, %v2392_v56  ;;  %2988 = vmatprep.mubr.msk.f32.mxu1 %vm3270_vm0, %v3271_v1 }
 0x43d   :  { %2996 = vmatprep.subr.mxu1 %v3271_v1 }
 0x43e   :  { %v1775_v60 = vpop.f32.mrb[20].mxu0 }
 0x43f   :  { %v1848_v62 = vpop.f32.mrb[20].mxu1  ;;  %v2945_v63 = vpop.f32.mrb[21].mxu0  ;;  %2984 = vmatmul.mubr.msk.f32.vlgmr.msra.gmra.mrb[28].mxu0 %vm707_vm2, %v1775_v60 }
 0x440   :  { %v2950_v0 = vpop.f32.mrb[21].mxu1  ;;  %2989 = vmatmul.mubr.msk.f32.vlgmr.msra.gmra.mrb[28].mxu1 %vm707_vm2, %v1848_v62  ;;  %2992 = vmatpush3.msk.msra.mxu0 %vm2004_vm5, %v2471_v59 }
 0x441   :  { %2997 = vmatpush3.msk.msra.mxu1 %vm2004_vm5, %v2550_v61  ;;  %2993 = vmatprep.mubr.msk.f32.mxu0 %vm3270_vm0, %v3271_v1 }
 0x442   :  { %2998 = vmatprep.mubr.msk.f32.mxu1 %vm3270_vm0, %v3271_v1 }
 0x446   :  { %v1921_v2 = vpop.f32.mrb[22].mxu0 }
 0x447   :  { %v1994_v3 = vpop.f32.mrb[22].mxu1  ;;  %v2955_v4 = vpop.f32.mrb[23].mxu0  ;;  %2994 = vmatmul.mubr.msk.f32.vlgmr.msra.gmra.mrb[30].mxu0 %vm707_vm2, %v1921_v2 }
 0x448   :  { %v2960_v5 = vpop.f32.mrb[23].mxu1  ;;  %2999 = vmatmul.mubr.msk.f32.vlgmr.msra.gmra.mrb[30].mxu1 %vm707_vm2, %v1994_v3 }
 0x502   :  { %v2150_v6 = vpop.f32.mrb[24].mxu1 }
 0x503   :  { %v2970_v7 = vpop.f32.mrb[25].mxu1 }
 0x506   :  { %v2074_v8 = vpop.f32.mrb[24].mxu0 }
 0x507   :  { %v2151_v9 = vadd.f32 %v2150_v6, %v2074_v8  ;;  %v2965_v10 = vpop.f32.mrb[25].mxu0 }
 0x50a   :  { %v2228_v11 = vpop.f32.mrb[26].mxu0 }
 0x50b   :  { %v2232_v12 = vadd.f32 %v2228_v11, %v2151_v9  ;;  %v2975_v13 = vpop.f32.mrb[27].mxu0 }
 0x50e   :  { %v2307_v14 = vpop.f32.mrb[26].mxu1 }
 0x50f   :  { %v2311_v15 = vadd.f32 %v2307_v14, %v2232_v12  ;;  %v2980_v16 = vpop.f32.mrb[27].mxu1 }
 0x512   :  { %v2386_v1 = vpop.f32.mrb[28].mxu0 }
 0x513   :  { %v2390_v17 = vadd.f32 %v2386_v1, %v2311_v15  ;;  %v2465_v18 = vpop.f32.mrb[28].mxu1  ;;  %v2985_v19 = vpop.f32.mrb[29].mxu0 }
 0x514   :  { %v2990_v20 = vpop.f32.mrb[29].mxu1 }
 0x515   :  { %v2469_v21 = vadd.f32 %v2465_v18, %v2390_v17 }
 0x51a   :  { %v2544_v22 = vpop.f32.mrb[30].mxu0 }
 0x51b   :  { %v2548_v23 = vadd.f32 %v2544_v22, %v2469_v21  ;;  %v2623_v24 = vpop.f32.mrb[30].mxu1  ;;  %v2995_v25 = vpop.f32.mrb[31].mxu0 }
 0x51c   :  { %v3000_v27 = vpop.f32.mrb[31].mxu1 }
 0x51d   :  { %v2627_v28 = vadd.f32 %v2623_v24, %v2548_v23 }
 0x51f   :  { %v2635_v29 = vadd.f32 %v2704_v26, %v2627_v28 }
 0x521   :  { %2637 = vst.msk [vmem:[#allocation13] sm:$0x3] %vm2636_vm6, %v2635_v29 }
 0x522   :  { %3238 = shalt.err (!%p3235_p10)
}
 0x523   :  { %s3239_s23 = scalar_lea.hbm %s3601_s6, 32 }
 0x524   :  { %p3240_p11 = scmp.ne.s32.totalorder %s3601_s6, %s3239_s23  ;;  %p3243_p12 = scmp.lt.u32.totalorder %s3239_s23, %s3601_s6 }
 0x526   :  { %p3245_p13 = pnand %p3243_p12, %p3240_p11 }
 0x528   :  { %3248 = shalt.err (!%p3245_p13)
}
 0x529   :  { %2647 = dma.vmem_to_hbm [thread:$0]  %s2645_s1, 32, %s3601_s6, [#allocation4]  }
 0x52a   :  { %3257 = dma.done.wait [#allocation4], 32  }
 0x52b   :  { %3258 = vsyncadd [#allocation4], 4294967264 }
 0x52c   :  { %2651 = vsyncpa [#allocation3], 1 }
 0x52d   :  { %2652 = vsyncpa [#allocation6], 1 }
 0x52e   :  { %2653 = vsyncpa [#allocation9], 1 }
 0x52f   :  { %2654 = vsyncpa [#allocation12], 1 }
 0x530   :  { %2655 = vsyncpa [#allocation4], 1 }

</bundles_post_ra>
